<compile_context>
chip_gen: v7x
topology: tpu7x:2x2x1
jax: 0.10.0
libtpu: 0.0.40
codegen_flags: <defaults>
</compile_context>

<pallas_src>
import jax
import jax.numpy as jnp
from jax.experimental import pallas as pl
from jax.experimental.pallas import tpu as pltpu


def _round_up(x, m):
    return ((x + m - 1) // m) * m


def _pet_head_kernel(src_ref, enc_ref, pq_ref,
                     gamma_ref, beta_ref,
                     wc_ref, bc_ref,
                     w1_ref, b1_ref, w2_ref, b2_ref, w3_ref, b3_ref,
                     logits_ref, points_ref, offsets_ref):
    # (C, TN) query features for this (batch, N-tile): channels on sublanes,
    # queries on the 128-lane axis.  Elementwise / LN math in f32 (v5e-safe).
    x = src_ref[0].astype(jnp.float32) + enc_ref[0].astype(jnp.float32)
    inv_c = 1.0 / float(x.shape[0])          # static channel count

    # One-pass LayerNorm over the channel (sublane) axis: biased var, eps=1e-5.
    s1 = jnp.sum(x, axis=0, keepdims=True)
    s2 = jnp.sum(x * x, axis=0, keepdims=True)
    mean = s1 * inv_c
    var = jnp.maximum(s2 * inv_c - mean * mean, 0.0)
    xn = (x - mean) * jax.lax.rsqrt(var + 1e-5)
    xn = xn * gamma_ref[...] + beta_ref[...]
    xn_b = xn.astype(jnp.bfloat16)

    # class_embed: (Kp1, C) @ (C, TN) -> (Kp1, TN), f32 accumulation on MXU.
    logits = jnp.dot(wc_ref[...], xn_b,
                     preferred_element_type=jnp.float32) + bc_ref[...]

    # coord_embed MLP (weights pre-transposed to (out, in), bf16 operands).
    h1 = jnp.maximum(
        jnp.dot(w1_ref[...], xn_b,
                preferred_element_type=jnp.float32) + b1_ref[...], 0.0)
    h2 = jnp.maximum(
        jnp.dot(w2_ref[...], h1.astype(jnp.bfloat16),
                preferred_element_type=jnp.float32) + b2_ref[...], 0.0)
    o = jnp.dot(w3_ref[...], h2.astype(jnp.bfloat16),
                preferred_element_type=jnp.float32) + b3_ref[...]

    # (sigmoid(o) - 0.5) * 2 == tanh(o / 2): one EUP op, less VALU work.
    offsets = jnp.tanh(0.5 * o)
    points = offsets + pq_ref[...]            # normalized (y; x) query rows

    logits_ref[0] = logits                    # (Kp1, TN)  lane-dense stores
    points_ref[0] = points                    # (2,  TN)
    offsets_ref[0] = offsets                  # (2,  TN)


def pet_heads(src_cn, enc_cn, pq_cn, kparams, *, tn=512):
    """src_cn, enc_cn: (bs, C, Npad) bf16; pq_cn: (2, Npad) f32 (Npad % tn == 0)."""
    bs, C, Npad = src_cn.shape
    Kp1 = kparams["wcT"].shape[0]
    TN = min(tn, Npad)
    assert TN % 128 == 0 and Npad % TN == 0, (TN, Npad)
    n_tiles = Npad // TN

    def const(shape):
        # Constant block index => fetched once, stays VMEM-resident.
        return pl.BlockSpec(shape, lambda b, n: (0,) * len(shape))

    grid_spec = pltpu.PrefetchScalarGridSpec(
        num_scalar_prefetch=0,
        grid=(bs, n_tiles),
        in_specs=[
            pl.BlockSpec((1, C, TN), lambda b, n: (b, 0, n)),   # src feats (bf16)
            pl.BlockSpec((1, C, TN), lambda b, n: (b, 0, n)),   # encode feats (bf16)
            pl.BlockSpec((2, TN), lambda b, n: (0, n)),         # normalized pq rows
            const((C, 1)), const((C, 1)),                       # LN gamma / beta
            const((Kp1, C)), const((Kp1, 1)),                   # class_embed W^T, b
            const((C, C)), const((C, 1)),                       # coord layer 1
            const((C, C)), const((C, 1)),                       # coord layer 2
            const((2, C)), const((2, 1)),                       # coord layer 3
        ],
        out_specs=[
            pl.BlockSpec((1, Kp1, TN), lambda b, n: (b, 0, n)),
            pl.BlockSpec((1, 2, TN), lambda b, n: (b, 0, n)),
            pl.BlockSpec((1, 2, TN), lambda b, n: (b, 0, n)),
        ],
    )
    out_shapes = (
        jax.ShapeDtypeStruct((bs, Kp1, Npad), jnp.float32),
        jax.ShapeDtypeStruct((bs, 2, Npad), jnp.float32),
        jax.ShapeDtypeStruct((bs, 2, Npad), jnp.float32),
    )
    return pl.pallas_call(
        _pet_head_kernel,
        out_shape=out_shapes,
        grid_spec=grid_spec,
        compiler_params=pltpu.CompilerParams(
            dimension_semantics=("parallel", "parallel"),
            vmem_limit_bytes=32 * 1024 * 1024),
    )(src_cn, enc_cn, pq_cn,
      kparams["ln_g"], kparams["ln_b"],
      kparams["wcT"], kparams["bc"],
      kparams["w1T"], kparams["b1"],
      kparams["w2T"], kparams["b2"],
      kparams["w3T"], kparams["b3"])


def prepare_kernel_params(params):
    """Transpose Linear weights to (out, in) bf16; biases/LN params -> (out, 1) f32."""
    bf16, f32 = jnp.bfloat16, jnp.float32
    return {
        "ln_g": params["ln_g"].reshape(-1, 1).astype(f32),
        "ln_b": params["ln_b"].reshape(-1, 1).astype(f32),
        "wcT": params["wc"].T.astype(bf16),
        "bc": params["bc"].reshape(-1, 1).astype(f32),
        "w1T": params["w1"].T.astype(bf16),
        "b1": params["b1"].reshape(-1, 1).astype(f32),
        "w2T": params["w2"].T.astype(bf16),
        "b2": params["b2"].reshape(-1, 1).astype(f32),
        "w3T": params["w3"].T.astype(bf16),
        "b3": params["b3"].reshape(-1, 1).astype(f32),
    }


def base_pet_count_forward(samples, feat_8x, encode_feats, params,
                           pq_stride=8, tn=512):
    """JAX glue reproducing BasePETCount.forward (non-'test' branch)."""
    # TODO(synk): the 'test' branch (window_partition + valid-window masking) is
    # data-dependent and not implemented; only the training/non-test path is.
    bs, _, img_h, img_w = samples.shape
    c = feat_8x.shape[1]

    # ---- get_point_query -------------------------------------------------
    sh = (img_h + pq_stride // 2 - 1) // pq_stride
    sw = (img_w + pq_stride // 2 - 1) // pq_stride
    shift_x = ((jnp.arange(sw) + 0.5) * pq_stride).astype(jnp.int32)
    shift_y = ((jnp.arange(sh) + 0.5) * pq_stride).astype(jnp.int32)
    yy, xx = jnp.meshgrid(shift_y, shift_x, indexing="ij")
    points_queries = jnp.stack([yy.flatten(), xx.flatten()], axis=1)      # (N, 2) int
    y_down = points_queries[:, 0] // pq_stride
    x_down = points_queries[:, 1] // pq_stride
    src_cn = feat_8x[:, :, y_down, x_down]                                # (bs, c, N)

    # F.interpolate(..., mode='nearest') to (sh, sw) -- stays channels-first
    Hs, Ws = encode_feats.shape[2:]
    iy = (jnp.arange(sh) * Hs // sh).astype(jnp.int32)
    ix = (jnp.arange(sw) * Ws // sw).astype(jnp.int32)
    enc_cn = encode_feats[:, :, iy[:, None], ix[None, :]].reshape(bs, c, -1)

    N = sh * sw
    # normalized point queries (predict(): /= img_h, /= img_w)
    pq_norm = points_queries.astype(jnp.float32) / jnp.array(
        [img_h, img_w], jnp.float32)                                      # (N, 2)

    # pad N to a multiple of the lane tile so every block is lane-dense
    TN = min(tn, _round_up(N, 128))
    Npad = _round_up(N, TN)
    pad = Npad - N
    src_cn = jnp.pad(src_cn.astype(jnp.bfloat16), ((0, 0), (0, 0), (0, pad)))
    enc_cn = jnp.pad(enc_cn.astype(jnp.bfloat16), ((0, 0), (0, 0), (0, pad)))
    pq_cn = jnp.pad(pq_norm.T, ((0, 0), (0, pad)))                        # (2, Npad)

    # ---- fused LayerNorm + heads (Pallas kernel) --------------------------
    kparams = prepare_kernel_params(params)
    logits_cn, points_cn, offsets_cn = pet_heads(src_cn, enc_cn, pq_cn,
                                                 kparams, tn=TN)

    # back to the module's (bs, N, K) layout (tiny tensors)
    logits = jnp.transpose(logits_cn[:, :, :N], (0, 2, 1))
    points = jnp.transpose(points_cn[:, :, :N], (0, 2, 1))
    offsets = jnp.transpose(offsets_cn[:, :, :N], (0, 2, 1))

    return {
        "pred_logits": logits,
        "pred_points": points,
        "img_shape": (img_h, img_w),
        "pred_offsets": offsets,
        "points_queries": pq_norm,
        "pq_stride": pq_stride,
    }


def init_params(key, hidden_dim, num_classes):
    """Deterministic synthetic parameters matching the module's __init__ shapes.

    Linear weights are stored PyTorch-style but transposed: (in_features, out_features).
    """
    ks = jax.random.split(key, 8)
    C, Kp1 = hidden_dim, num_classes + 1

    def lin(k, n_in, n_out):
        s = 1.0 / jnp.sqrt(jnp.float32(n_in))
        return jax.random.uniform(k, (n_in, n_out), jnp.float32, -s, s)

    return {
        "ln_g": jnp.ones((1, C), jnp.float32),
        "ln_b": jnp.zeros((1, C), jnp.float32),
        "wc": lin(ks[0], C, Kp1),
        "bc": jax.random.uniform(ks[1], (1, Kp1), jnp.float32, -0.1, 0.1),
        "w1": lin(ks[2], C, C),
        "b1": jax.random.uniform(ks[3], (1, C), jnp.float32, -0.1, 0.1),
        "w2": lin(ks[4], C, C),
        "b2": jax.random.uniform(ks[5], (1, C), jnp.float32, -0.1, 0.1),
        "w3": lin(ks[6], C, 2),
        "b3": jax.random.uniform(ks[7], (1, 2), jnp.float32, -0.1, 0.1),
    }


def _reference_heads(src_nc, enc_nc, pq_norm, p):
    """Pure-JAX reference mirroring the kernel's bf16 quantization points."""
    q = lambda a: a.astype(jnp.bfloat16)
    x = src_nc + enc_nc                                  # inputs already bf16-rounded
    mean = jnp.mean(x, axis=-1, keepdims=True)
    var = jnp.maximum(jnp.mean(x * x, axis=-1, keepdims=True) - mean * mean, 0.0)
    xn = (x - mean) * jax.lax.rsqrt(var + 1e-5) * p["ln_g"] + p["ln_b"]
    xb = q(xn)
    logits = jnp.dot(xb, q(p["wc"]), preferred_element_type=jnp.float32) + p["bc"]
    h1 = jax.nn.relu(jnp.dot(xb, q(p["w1"]),
                             preferred_element_type=jnp.float32) + p["b1"])
    h2 = jax.nn.relu(jnp.dot(q(h1), q(p["w2"]),
                             preferred_element_type=jnp.float32) + p["b2"])
    o = jnp.dot(q(h2), q(p["w3"]), preferred_element_type=jnp.float32) + p["b3"]
    off = (jax.nn.sigmoid(o) - 0.5) * 2.0
    return logits, off + pq_norm, off


if __name__ == "__main__":
    key = jax.random.PRNGKey(0)
    k_samp, k_feat, k_enc, k_par = jax.random.split(key, 4)

    bs, hidden_dim, num_classes = 2, 32, 1
    img_h = img_w = 64
    pq_stride = 8                     # sparse branch ('8x' features)

    samples = jax.random.normal(k_samp, (bs, 3, img_h, img_w), jnp.float32)
    feat_8x = jax.random.normal(
        k_feat, (bs, hidden_dim, img_h // 8, img_w // 8), jnp.float32)
    encode_feats = jax.random.normal(
        k_enc, (bs, hidden_dim, 4, 4), jnp.float32)

    params = init_params(k_par, hidden_dim, num_classes)

    out = base_pet_count_forward(samples, feat_8x, encode_feats, params,
                                 pq_stride=pq_stride)
    jax.block_until_ready(out["pred_points"])

    # ---- sanity check against a pure-JAX reference of the fused head ------
    sh = (img_h + pq_stride // 2 - 1) // pq_stride
    sw = (img_w + pq_stride // 2 - 1) // pq_stride
    N = sh * sw
    yy, xx = jnp.meshgrid(
        ((jnp.arange(sh) + 0.5) * pq_stride).astype(jnp.int32),
        ((jnp.arange(sw) + 0.5) * pq_stride).astype(jnp.int32), indexing="ij")
    pq = jnp.stack([yy.flatten(), xx.flatten()], axis=1)
    src_nc = jnp.transpose(
        feat_8x[:, :, pq[:, 0] // pq_stride, pq[:, 1] // pq_stride],
        (0, 2, 1)).astype(jnp.bfloat16).astype(jnp.float32)
    Hs, Ws = encode_feats.shape[2:]
    iy = (jnp.arange(sh) * Hs // sh)
    ix = (jnp.arange(sw) * Ws // sw)
    enc_nc = jnp.transpose(
        encode_feats[:, :, iy[:, None], ix[None, :]].reshape(bs, hidden_dim, -1),
        (0, 2, 1)).astype(jnp.bfloat16).astype(jnp.float32)
    pq_norm = pq.astype(jnp.float32) / jnp.array([img_h, img_w], jnp.float32)
    ref_logits, ref_points, ref_off = _reference_heads(src_nc, enc_nc, pq_norm, params)

    assert out["pred_logits"].shape == (bs, N, num_classes + 1)
    assert out["pred_points"].shape == (bs, N, 2)
    assert jnp.allclose(out["pred_logits"], ref_logits, atol=5e-3, rtol=5e-3)
    assert jnp.allclose(out["pred_points"], ref_points, atol=5e-3, rtol=5e-3)
    assert jnp.allclose(out["pred_offsets"], ref_off, atol=5e-3, rtol=5e-3)

    print("KERNEL_OK")
</pallas_src>

<mosaic_0001>
module attributes {stable_mosaic.version = 11 : i64} {
  func.func @_pet_head_kernel(%arg0: i32, %arg1: i32, %arg2: memref<1x32x128xbf16, #tpu.memory_space<vmem>>, %arg3: memref<1x32x128xbf16, #tpu.memory_space<vmem>>, %arg4: memref<2x128xf32, #tpu.memory_space<vmem>>, %arg5: memref<32x1xf32, #tpu.memory_space<vmem>>, %arg6: memref<32x1xf32, #tpu.memory_space<vmem>>, %arg7: memref<2x32xbf16, #tpu.memory_space<vmem>>, %arg8: memref<2x1xf32, #tpu.memory_space<vmem>>, %arg9: memref<32x32xbf16, #tpu.memory_space<vmem>>, %arg10: memref<32x1xf32, #tpu.memory_space<vmem>>, %arg11: memref<32x32xbf16, #tpu.memory_space<vmem>>, %arg12: memref<32x1xf32, #tpu.memory_space<vmem>>, %arg13: memref<2x32xbf16, #tpu.memory_space<vmem>>, %arg14: memref<2x1xf32, #tpu.memory_space<vmem>>, %arg15: memref<1x2x128xf32, #tpu.memory_space<vmem>>, %arg16: memref<1x2x128xf32, #tpu.memory_space<vmem>>, %arg17: memref<1x2x128xf32, #tpu.memory_space<vmem>>) attributes {dimension_semantics = [#tpu.dimension_semantics<parallel>, #tpu.dimension_semantics<parallel>], iteration_bounds = array<i64: 2, 1>, scalar_prefetch = 0 : i64, scratch_operands = 0 : i64, tpu.core_type = #tpu.core_type<tc>, window_params = [{transform_indices = @transform_0, window_bounds = array<i64: 1, 32, 128>}, {transform_indices = @transform_1, window_bounds = array<i64: 1, 32, 128>}, {transform_indices = @transform_2, window_bounds = array<i64: 2, 128>}, {pipeline_mode = #tpu.pipeline_mode<synchronous>, transform_indices = @transform_3, window_bounds = array<i64: 32, 1>}, {pipeline_mode = #tpu.pipeline_mode<synchronous>, transform_indices = @transform_4, window_bounds = array<i64: 32, 1>}, {pipeline_mode = #tpu.pipeline_mode<synchronous>, transform_indices = @transform_5, window_bounds = array<i64: 2, 32>}, {pipeline_mode = #tpu.pipeline_mode<synchronous>, transform_indices = @transform_6, window_bounds = array<i64: 2, 1>}, {pipeline_mode = #tpu.pipeline_mode<synchronous>, transform_indices = @transform_7, window_bounds = array<i64: 32, 32>}, {pipeline_mode = #tpu.pipeline_mode<synchronous>, transform_indices = @transform_8, window_bounds = array<i64: 32, 1>}, {pipeline_mode = #tpu.pipeline_mode<synchronous>, transform_indices = @transform_9, window_bounds = array<i64: 32, 32>}, {pipeline_mode = #tpu.pipeline_mode<synchronous>, transform_indices = @transform_10, window_bounds = array<i64: 32, 1>}, {pipeline_mode = #tpu.pipeline_mode<synchronous>, transform_indices = @transform_11, window_bounds = array<i64: 2, 32>}, {pipeline_mode = #tpu.pipeline_mode<synchronous>, transform_indices = @transform_12, window_bounds = array<i64: 2, 1>}, {transform_indices = @transform_13, window_bounds = array<i64: 1, 2, 128>}, {transform_indices = @transform_14, window_bounds = array<i64: 1, 2, 128>}, {transform_indices = @transform_15, window_bounds = array<i64: 1, 2, 128>}]} {
    %c0 = arith.constant 0 : index
    %c0_0 = arith.constant 0 : index
    %c0_1 = arith.constant 0 : index
    %0 = vector.load %arg2[%c0, %c0_0, %c0_1] : memref<1x32x128xbf16, #tpu.memory_space<vmem>>, vector<1x32x128xbf16>
    %1 = vector.shape_cast %0 : vector<1x32x128xbf16> to vector<32x128xbf16>
    %2 = arith.extf %1 : vector<32x128xbf16> to vector<32x128xf32>
    %c0_2 = arith.constant 0 : index
    %c0_3 = arith.constant 0 : index
    %c0_4 = arith.constant 0 : index
    %3 = vector.load %arg3[%c0_2, %c0_3, %c0_4] : memref<1x32x128xbf16, #tpu.memory_space<vmem>>, vector<1x32x128xbf16>
    %4 = vector.shape_cast %3 : vector<1x32x128xbf16> to vector<32x128xbf16>
    %5 = arith.extf %4 : vector<32x128xbf16> to vector<32x128xf32>
    %6 = arith.addf %2, %5 : vector<32x128xf32>
    %cst = arith.constant dense<0.000000e+00> : vector<128xf32>
    %7 = vector.multi_reduction <add>, %6, %cst [0] : vector<32x128xf32> to vector<128xf32>
    %8 = vector.shape_cast %7 : vector<128xf32> to vector<1x128xf32>
    %9 = arith.mulf %6, %6 : vector<32x128xf32>
    %cst_5 = arith.constant dense<0.000000e+00> : vector<128xf32>
    %10 = vector.multi_reduction <add>, %9, %cst_5 [0] : vector<32x128xf32> to vector<128xf32>
    %11 = vector.shape_cast %10 : vector<128xf32> to vector<1x128xf32>
    %cst_6 = arith.constant 3.125000e-02 : f32
    %12 = vector.broadcast %cst_6 : f32 to vector<1x128xf32>
    %13 = arith.mulf %8, %12 : vector<1x128xf32>
    %cst_7 = arith.constant 3.125000e-02 : f32
    %14 = vector.broadcast %cst_7 : f32 to vector<1x128xf32>
    %15 = arith.mulf %11, %14 : vector<1x128xf32>
    %16 = arith.mulf %13, %13 : vector<1x128xf32>
    %17 = arith.subf %15, %16 : vector<1x128xf32>
    %cst_8 = arith.constant 0.000000e+00 : f32
    %18 = vector.broadcast %cst_8 : f32 to vector<1x128xf32>
    %19 = arith.maximumf %17, %18 : vector<1x128xf32>
    %20 = vector.broadcast %13 : vector<1x128xf32> to vector<32x128xf32>
    %21 = arith.subf %6, %20 : vector<32x128xf32>
    %cst_9 = arith.constant 9.99999974E-6 : f32
    %22 = vector.broadcast %cst_9 : f32 to vector<1x128xf32>
    %23 = arith.addf %19, %22 : vector<1x128xf32>
    %24 = math.rsqrt %23 : vector<1x128xf32>
    %25 = vector.broadcast %24 : vector<1x128xf32> to vector<32x128xf32>
    %26 = arith.mulf %21, %25 : vector<32x128xf32>
    %c0_10 = arith.constant 0 : index
    %c0_11 = arith.constant 0 : index
    %27 = vector.load %arg5[%c0_10, %c0_11] : memref<32x1xf32, #tpu.memory_space<vmem>>, vector<32x1xf32>
    %28 = vector.broadcast %27 : vector<32x1xf32> to vector<32x128xf32>
    %29 = arith.mulf %26, %28 : vector<32x128xf32>
    %c0_12 = arith.constant 0 : index
    %c0_13 = arith.constant 0 : index
    %30 = vector.load %arg6[%c0_12, %c0_13] : memref<32x1xf32, #tpu.memory_space<vmem>>, vector<32x1xf32>
    %31 = vector.broadcast %30 : vector<32x1xf32> to vector<32x128xf32>
    %32 = arith.addf %29, %31 : vector<32x128xf32>
    %33 = arith.truncf %32 : vector<32x128xf32> to vector<32x128xbf16>
    %c0_14 = arith.constant 0 : index
    %c0_15 = arith.constant 0 : index
    %34 = vector.load %arg7[%c0_14, %c0_15] : memref<2x32xbf16, #tpu.memory_space<vmem>>, vector<2x32xbf16>
    %cst_16 = arith.constant dense<0.000000e+00> : vector<2x128xf32>
    %35 = tpu.matmul %34, %33, %cst_16 {dimension_numbers = #tpu.dot_dimension_numbers<[1], [0], [0], [1], [0, 0, 1, 1], [], []>} : vector<2x32xbf16>, vector<32x128xbf16>, vector<2x128xf32> -> vector<2x128xf32>
    %c0_17 = arith.constant 0 : index
    %c0_18 = arith.constant 0 : index
    %36 = vector.load %arg8[%c0_17, %c0_18] : memref<2x1xf32, #tpu.memory_space<vmem>>, vector<2x1xf32>
    %37 = vector.broadcast %36 : vector<2x1xf32> to vector<2x128xf32>
    %38 = arith.addf %35, %37 : vector<2x128xf32>
    %c0_19 = arith.constant 0 : index
    %c0_20 = arith.constant 0 : index
    %39 = vector.load %arg9[%c0_19, %c0_20] : memref<32x32xbf16, #tpu.memory_space<vmem>>, vector<32x32xbf16>
    %cst_21 = arith.constant dense<0.000000e+00> : vector<32x128xf32>
    %40 = tpu.matmul %39, %33, %cst_21 {dimension_numbers = #tpu.dot_dimension_numbers<[1], [0], [0], [1], [0, 0, 1, 1], [], []>} : vector<32x32xbf16>, vector<32x128xbf16>, vector<32x128xf32> -> vector<32x128xf32>
    %c0_22 = arith.constant 0 : index
    %c0_23 = arith.constant 0 : index
    %41 = vector.load %arg10[%c0_22, %c0_23] : memref<32x1xf32, #tpu.memory_space<vmem>>, vector<32x1xf32>
    %42 = vector.broadcast %41 : vector<32x1xf32> to vector<32x128xf32>
    %43 = arith.addf %40, %42 : vector<32x128xf32>
    %cst_24 = arith.constant 0.000000e+00 : f32
    %44 = vector.broadcast %cst_24 : f32 to vector<32x128xf32>
    %45 = arith.maximumf %43, %44 : vector<32x128xf32>
    %c0_25 = arith.constant 0 : index
    %c0_26 = arith.constant 0 : index
    %46 = vector.load %arg11[%c0_25, %c0_26] : memref<32x32xbf16, #tpu.memory_space<vmem>>, vector<32x32xbf16>
    %47 = arith.truncf %45 : vector<32x128xf32> to vector<32x128xbf16>
    %cst_27 = arith.constant dense<0.000000e+00> : vector<32x128xf32>
    %48 = tpu.matmul %46, %47, %cst_27 {dimension_numbers = #tpu.dot_dimension_numbers<[1], [0], [0], [1], [0, 0, 1, 1], [], []>} : vector<32x32xbf16>, vector<32x128xbf16>, vector<32x128xf32> -> vector<32x128xf32>
    %c0_28 = arith.constant 0 : index
    %c0_29 = arith.constant 0 : index
    %49 = vector.load %arg12[%c0_28, %c0_29] : memref<32x1xf32, #tpu.memory_space<vmem>>, vector<32x1xf32>
    %50 = vector.broadcast %49 : vector<32x1xf32> to vector<32x128xf32>
    %51 = arith.addf %48, %50 : vector<32x128xf32>
    %cst_30 = arith.constant 0.000000e+00 : f32
    %52 = vector.broadcast %cst_30 : f32 to vector<32x128xf32>
    %53 = arith.maximumf %51, %52 : vector<32x128xf32>
    %c0_31 = arith.constant 0 : index
    %c0_32 = arith.constant 0 : index
    %54 = vector.load %arg13[%c0_31, %c0_32] : memref<2x32xbf16, #tpu.memory_space<vmem>>, vector<2x32xbf16>
    %55 = arith.truncf %53 : vector<32x128xf32> to vector<32x128xbf16>
    %cst_33 = arith.constant dense<0.000000e+00> : vector<2x128xf32>
    %56 = tpu.matmul %54, %55, %cst_33 {dimension_numbers = #tpu.dot_dimension_numbers<[1], [0], [0], [1], [0, 0, 1, 1], [], []>} : vector<2x32xbf16>, vector<32x128xbf16>, vector<2x128xf32> -> vector<2x128xf32>
    %c0_34 = arith.constant 0 : index
    %c0_35 = arith.constant 0 : index
    %57 = vector.load %arg14[%c0_34, %c0_35] : memref<2x1xf32, #tpu.memory_space<vmem>>, vector<2x1xf32>
    %58 = vector.broadcast %57 : vector<2x1xf32> to vector<2x128xf32>
    %59 = arith.addf %56, %58 : vector<2x128xf32>
    %cst_36 = arith.constant 5.000000e-01 : f32
    %60 = vector.broadcast %cst_36 : f32 to vector<2x128xf32>
    %61 = arith.mulf %60, %59 : vector<2x128xf32>
    %62 = math.tanh %61 : vector<2x128xf32>
    %c0_37 = arith.constant 0 : index
    %c0_38 = arith.constant 0 : index
    %63 = vector.load %arg4[%c0_37, %c0_38] : memref<2x128xf32, #tpu.memory_space<vmem>>, vector<2x128xf32>
    %64 = arith.addf %62, %63 : vector<2x128xf32>
    %c0_39 = arith.constant 0 : index
    %c0_40 = arith.constant 0 : index
    %c0_41 = arith.constant 0 : index
    %65 = vector.load %arg15[%c0_39, %c0_40, %c0_41] : memref<1x2x128xf32, #tpu.memory_space<vmem>>, vector<1x2x128xf32>
    %66 = vector.shape_cast %65 : vector<1x2x128xf32> to vector<2x128xf32>
    %67 = vector.shape_cast %38 : vector<2x128xf32> to vector<1x2x128xf32>
    tpu.vector_store %arg15[%c0_39, %c0_40, %c0_41], %67 {strides = array<i32>} : memref<1x2x128xf32, #tpu.memory_space<vmem>>, vector<1x2x128xf32>,
    %c0_42 = arith.constant 0 : index
    %c0_43 = arith.constant 0 : index
    %c0_44 = arith.constant 0 : index
    %68 = vector.load %arg16[%c0_42, %c0_43, %c0_44] : memref<1x2x128xf32, #tpu.memory_space<vmem>>, vector<1x2x128xf32>
    %69 = vector.shape_cast %68 : vector<1x2x128xf32> to vector<2x128xf32>
    %70 = vector.shape_cast %64 : vector<2x128xf32> to vector<1x2x128xf32>
    tpu.vector_store %arg16[%c0_42, %c0_43, %c0_44], %70 {strides = array<i32>} : memref<1x2x128xf32, #tpu.memory_space<vmem>>, vector<1x2x128xf32>,
    %c0_45 = arith.constant 0 : index
    %c0_46 = arith.constant 0 : index
    %c0_47 = arith.constant 0 : index
    %71 = vector.load %arg17[%c0_45, %c0_46, %c0_47] : memref<1x2x128xf32, #tpu.memory_space<vmem>>, vector<1x2x128xf32>
    %72 = vector.shape_cast %71 : vector<1x2x128xf32> to vector<2x128xf32>
    %73 = vector.shape_cast %62 : vector<2x128xf32> to vector<1x2x128xf32>
    tpu.vector_store %arg17[%c0_45, %c0_46, %c0_47], %73 {strides = array<i32>} : memref<1x2x128xf32, #tpu.memory_space<vmem>>, vector<1x2x128xf32>,
    return
  }
  func.func @transform_0(%arg0: i32, %arg1: i32) -> (i32, i32, i32) {
    %c0_i32 = arith.constant 0 : i32
    %c0_i32_0 = arith.constant 0 : i32
    return %arg0, %c0_i32, %arg1 : i32, i32, i32
  }
  func.func @transform_1(%arg0: i32, %arg1: i32) -> (i32, i32, i32) {
    %c0_i32 = arith.constant 0 : i32
    %c0_i32_0 = arith.constant 0 : i32
    return %arg0, %c0_i32, %arg1 : i32, i32, i32
  }
  func.func @transform_2(%arg0: i32, %arg1: i32) -> (i32, i32) {
    %c0_i32 = arith.constant 0 : i32
    %c0_i32_0 = arith.constant 0 : i32
    return %c0_i32, %arg1 : i32, i32
  }
  func.func @transform_3(%arg0: i32, %arg1: i32) -> (i32, i32) {
    %c0_i32 = arith.constant 0 : i32
    %c0_i32_0 = arith.constant 0 : i32
    %c0_i32_1 = arith.constant 0 : i32
    return %c0_i32, %c0_i32_0 : i32, i32
  }
  func.func @transform_4(%arg0: i32, %arg1: i32) -> (i32, i32) {
    %c0_i32 = arith.constant 0 : i32
    %c0_i32_0 = arith.constant 0 : i32
    %c0_i32_1 = arith.constant 0 : i32
    return %c0_i32, %c0_i32_0 : i32, i32
  }
  func.func @transform_5(%arg0: i32, %arg1: i32) -> (i32, i32) {
    %c0_i32 = arith.constant 0 : i32
    %c0_i32_0 = arith.constant 0 : i32
    %c0_i32_1 = arith.constant 0 : i32
    return %c0_i32, %c0_i32_0 : i32, i32
  }
  func.func @transform_6(%arg0: i32, %arg1: i32) -> (i32, i32) {
    %c0_i32 = arith.constant 0 : i32
    %c0_i32_0 = arith.constant 0 : i32
    %c0_i32_1 = arith.constant 0 : i32
    return %c0_i32, %c0_i32_0 : i32, i32
  }
  func.func @transform_7(%arg0: i32, %arg1: i32) -> (i32, i32) {
    %c0_i32 = arith.constant 0 : i32
    %c0_i32_0 = arith.constant 0 : i32
    %c0_i32_1 = arith.constant 0 : i32
    return %c0_i32, %c0_i32_0 : i32, i32
  }
  func.func @transform_8(%arg0: i32, %arg1: i32) -> (i32, i32) {
    %c0_i32 = arith.constant 0 : i32
    %c0_i32_0 = arith.constant 0 : i32
    %c0_i32_1 = arith.constant 0 : i32
    return %c0_i32, %c0_i32_0 : i32, i32
  }
  func.func @transform_9(%arg0: i32, %arg1: i32) -> (i32, i32) {
    %c0_i32 = arith.constant 0 : i32
    %c0_i32_0 = arith.constant 0 : i32
    %c0_i32_1 = arith.constant 0 : i32
    return %c0_i32, %c0_i32_0 : i32, i32
  }
  func.func @transform_10(%arg0: i32, %arg1: i32) -> (i32, i32) {
    %c0_i32 = arith.constant 0 : i32
    %c0_i32_0 = arith.constant 0 : i32
    %c0_i32_1 = arith.constant 0 : i32
    return %c0_i32, %c0_i32_0 : i32, i32
  }
  func.func @transform_11(%arg0: i32, %arg1: i32) -> (i32, i32) {
    %c0_i32 = arith.constant 0 : i32
    %c0_i32_0 = arith.constant 0 : i32
    %c0_i32_1 = arith.constant 0 : i32
    return %c0_i32, %c0_i32_0 : i32, i32
  }
  func.func @transform_12(%arg0: i32, %arg1: i32) -> (i32, i32) {
    %c0_i32 = arith.constant 0 : i32
    %c0_i32_0 = arith.constant 0 : i32
    %c0_i32_1 = arith.constant 0 : i32
    return %c0_i32, %c0_i32_0 : i32, i32
  }
  func.func @transform_13(%arg0: i32, %arg1: i32) -> (i32, i32, i32) {
    %c0_i32 = arith.constant 0 : i32
    %c0_i32_0 = arith.constant 0 : i32
    return %arg0, %c0_i32, %arg1 : i32, i32, i32
  }
  func.func @transform_14(%arg0: i32, %arg1: i32) -> (i32, i32, i32) {
    %c0_i32 = arith.constant 0 : i32
    %c0_i32_0 = arith.constant 0 : i32
    return %arg0, %c0_i32, %arg1 : i32, i32, i32
  }
  func.func @transform_15(%arg0: i32, %arg1: i32) -> (i32, i32, i32) {
    %c0_i32 = arith.constant 0 : i32
    %c0_i32_0 = arith.constant 0 : i32
    return %arg0, %c0_i32, %arg1 : i32, i32, i32
  }
}

</mosaic_0001>

<bundles_post_ra>
// kernel: tpu_custom_call.1
= control target key start
LH: loop header
LB: loop body
LE: loop exit
PB: predicated region body
PF: predicated region fallthrough
CT: control target
= control target key end

     0   :  { %s1921_s0 = inlined_call_operand.vmem [shape: bf16[2,32,128], index: 0, kind: input, shape index: {}]   ;;  %s1922_s1 = inlined_call_operand.vmem [shape: bf16[2,32,128], index: 1, kind: input, shape index: {}]   ;;  %s1923_s2 = inlined_call_operand.vmem [shape: f32[2,128], index: 2, kind: input, shape index: {}]   ;;  %s1924_s3 = inlined_call_operand.vmem [shape: f32[32,1], index: 3, kind: input, shape index: {}]   ;;  %s1925_s4 = inlined_call_operand.vmem [shape: f32[32,1], index: 4, kind: input, shape index: {}]   ;;  %s1926_s5 = inlined_call_operand.vmem [shape: bf16[2,32], index: 5, kind: input, shape index: {}]   ;;  %s1927_s6 = inlined_call_operand.vmem [shape: f32[2,1], index: 6, kind: input, shape index: {}]   ;;  %s1928_s7 = inlined_call_operand.vmem [shape: bf16[32,32], index: 7, kind: input, shape index: {}]   ;;  %s1929_s8 = inlined_call_operand.vmem [shape: f32[32,1], index: 8, kind: input, shape index: {}]   ;;  %s1930_s9 = inlined_call_operand.vmem [shape: bf16[32,32], index: 9, kind: input, shape index: {}]   ;;  %s1931_s10 = inlined_call_operand.vmem [shape: f32[32,1], index: 10, kind: input, shape index: {}]   ;;  %s1932_s11 = inlined_call_operand.vmem [shape: bf16[2,32], index: 11, kind: input, shape index: {}]   ;;  %s1933_s12 = inlined_call_operand.vmem [shape: f32[2,1], index: 12, kind: input, shape index: {}]   ;;  %s1934_s13 = inlined_call_operand.hbm [shape: f32[2,2,128], index: 13, kind: output, shape index: {0}]   ;;  %s1935_s14 = inlined_call_operand.hbm [shape: f32[2,2,128], index: 14, kind: output, shape index: {1}]   ;;  %s1936_s15 = inlined_call_operand.hbm [shape: f32[2,2,128], index: 15, kind: output, shape index: {2}]  }
   0x1   :  { %1943 = sst [smem:[#allocation13_spill]] %s1921_s0 }
   0x2   :  { %1944 = sst [smem:[#allocation14_spill]] %s1922_s1 }
   0x3   :  { %1945 = sst [smem:[#allocation15_spill]] %s1923_s2 }
   0x4   :  { %1946 = sst [smem:[#allocation16_spill]] %s1924_s3 }
   0x5   :  { %1947 = sst [smem:[#allocation17_spill]] %s1925_s4 }
   0x6   :  { %1948 = sst [smem:[#allocation18_spill]] %s1926_s5 }
   0x7   :  { %1949 = sst [smem:[#allocation19_spill]] %s1936_s15 }
   0x8   :  { %21 = vsyncpa [#allocation3], 0 }
   0x9   :  { %23 = vsyncpa [#allocation3 + $0x1], 0 }
   0xa   :  { %24 = vsyncpa [#allocation5], 0 }
   0xb   :  { %26 = vsyncpa [#allocation5 + $0x1], 0  ;;  %s1634_s18 = smov 0   ;;  %s1636_s19 = smov 0  }
   0xc   :  { %s1638_s20 = smov 0   ;;  %s1640_s21 = smov 0  }
   0xd   :  { %s1642_s22 = smov 0   ;;  %s1644_s23 = smov 0  }
   0xe LB: > { %1950 = sst [smem:[#allocation9_spill]] %s1526_s18  ;;  %s1937_s24 = sadd.s32 4294967295, %s1546_s23   ;;  %s1546_s23 = sphi %s1644_s23, %s32_s23   ;;  %s1542_s22 = sphi %s1642_s22, %s1969_s22   ;;  %s1538_s21 = sphi %s1640_s21, %s1968_s21   ;;  %s1534_s20 = sphi %s1638_s20, %s1972_s20   ;;  %s1530_s19 = sphi %s1636_s19, %s1971_s19   ;;  %s1526_s18 = sphi %s1634_s18, %s1970_s18  }
   0xf   : > { %1951 = sst [smem:[#allocation10_spill]] %s1542_s22  ;;  %s1940_s25 = sadd.s32 4294967294, %s1546_s23  }
  0x10   : > { %s44_s26 = sadd.s32 1, %s1542_s22  ;;  %s345_s27 = sadd.s32 1, %s1534_s20 }
  0x11   : > { %p46_p0 = scmp.ge.s32.totalorder %s44_s26, 2  ;;  %p355_p1 = scmp.ne.s32.totalorder %s1534_s20, %s1530_s19 }
  0x12   : > { %p356_p2 = scmp.eq.s32.totalorder %s1937_s24, 1  ;;  %p361_p3 = scmp.ne.s32.totalorder %s1530_s19, %s1526_s18 }
  0x13   : > { %s1974_s26 = smov (%p46_p0, %s44_s26), 0  ;;  %p362_p5 = scmp.eq.s32.totalorder %s1940_s25, 1 }
  0x14   : > { %1952 = sst [smem:[#allocation11_spill]] %s1974_s26  ;;  %p1676_p4 = por %p356_p2, %p355_p1 }
  0x15   : > { %s340_s29 = ssub.s32 %s1542_s22, %s1974_s26  ;;  %p1238_p6 = scmp.ge.s32.totalorder %s1546_s23, 1 }
  0x16   : > { %p343_p7 = scmp.eq.s32.totalorder %s340_s29, 0  ;;  %p1685_p8 = por %p362_p5, %p361_p3 }
  0x17   : > { %p495_p9 = scmp.lt.s32.totalorder %s1546_s23, 3 }
  0x18   : > { %s1691_s16 = scalar_select %p343_p7, %s1534_s20, %s345_s27  }
  0x19   : > { %p496_p10 = pnand %p1238_p6, %p495_p9 }
  0x1a   : > { %1955 = sst [smem:[#allocation12_spill]] %s1691_s16  ;;  %s1956_s4 = sld [smem:[#allocation17_spill]] (!%p496_p10)  ;;  %v1548_v2 = vmov (!%p496_p10), 0   ;;  %v1549_v9 = vmov (!%p496_p10), 0.0   ;;  %v760_v10 = vld [vmem:[%s1929_s8 + $0x8] sm:$0xff] (!%p496_p10)  ;;  %v759_v11 = vld [vmem:[%s1929_s8] sm:$0xff] (!%p496_p10) }
  0x1b   : > { %499 = sbr.rel (%p496_p10) target bundleno = 904 (0x388), region = 72  ;;  %s1957_s3 = sld [smem:[#allocation16_spill]] (!%p496_p10)  ;;  %1399 = vset.pattern.permute.xlu1 (!%p496_p10), %v1548_v2  ;;  %1398 = vset.pattern.permute.xlu0 (!%p496_p10), %v1548_v2  ;;  %v762_v12 = vld [vmem:[%s1929_s8 + $0x18] sm:$0xff] (!%p496_p10)  ;;  %v761_v13 = vld [vmem:[%s1929_s8 + $0x10] sm:$0xff] (!%p496_p10)  ;;  %vm711_vm0 = vcmask (!%p496_p10), 261120   ;;  %v1400_v14 = vld [vmem:[%s1928_s7] sm:$0xff] (!%p496_p10)  }
  0x1c   : > { %1298 = vmatprep.subr.bf16.mxu0 (!%p496_p10), %v1549_v9  ;;  %vm1550_vm1 = vmmov (!%p496_p10), 0   ;;  %1310 = vmatprep.mubr.msk.bf16.mxu1 (!%p496_p10), %vm711_vm0, %v1400_v14  ;;  %v859_v15 = vld [vmem:[%s1931_s10 + $0x8] sm:$0xff] (!%p496_p10)  ;;  %v858_v16 = vld [vmem:[%s1931_s10] sm:$0xff] (!%p496_p10)  ;;  %v861_v17 = vld [vmem:[%s1931_s10 + $0x18] sm:$0xff] (!%p496_p10)  ;;  %p568_p11 = scmp.lt.s32.totalorder (!%p496_p10), %s1538_s21, 1  ;;  %s1958_s0 = sld [smem:[#allocation13_spill]] (!%p496_p10) }
  0x1d   : > { %1302 = vmatprep.mubr.msk.bf16.mxu0 (!%p496_p10), %vm1550_vm1, %v1549_v9  ;;  %v860_v18 = vld [vmem:[%s1931_s10 + $0x10] sm:$0xff] (!%p496_p10)  ;;  %v705_v19 = vld [vmem:[%s1927_s6] sm:$0x3] (!%p496_p10)  ;;  %s1959_s1 = sld [smem:[#allocation14_spill]] (!%p496_p10)  ;;  %s1960_s5 = sld [smem:[#allocation18_spill]] (!%p496_p10) }
  0x1e   : > { %v954_v20 = vld [vmem:[%s1933_s12] sm:$0x3] (!%p496_p10)  ;;  %s1551_s18 = smov (!%p496_p10), [#allocation2]  }
  0x20   : > { %v674_v0 = vld [vmem:[%s1956_s4] sm:$0xff] (!%p496_p10)  ;;  %v675_v3 = vld [vmem:[%s1956_s4 + $0x8] sm:$0xff] (!%p496_p10)  ;;  %v677_v7 = vld [vmem:[%s1956_s4 + $0x18] sm:$0xff] (!%p496_p10) }
  0x21   : > { %v646_v1 = vld [vmem:[%s1957_s3] sm:$0xff] (!%p496_p10)  ;;  %680 = vperm.xlu1 (!%p496_p10), %1399, %v674_v0   ;;  %v647_v4 = vld [vmem:[%s1957_s3 + $0x8] sm:$0xff] (!%p496_p10)  ;;  %v649_v5 = vld [vmem:[%s1957_s3 + $0x18] sm:$0xff] (!%p496_p10) }
  0x22   : > { %652 = vperm.xlu0 %1398, %v646_v1   ;;  %v648_v6 = vld [vmem:[%s1957_s3 + $0x10] sm:$0xff]  ;;  %s569_s24 = scalar_select %p568_p11, %s1538_s21, 1 }
  0x23   : > { %v676_v8 = vld [vmem:[%s1956_s4 + $0x10] sm:$0xff]  ;;  %s1412_s3 = sshll.u32 %s1551_s18, 4  ;;  %s1413_s3 = int_to_ptr.vmem [resolvable:$false] %s1412_s3 }
  0x24   : > { %s1264_s17 = sshll.u32 %s569_s24, 4  ;;  %s551_s24 = sand.u32 1, %s1530_s19  }
  0x25   : > { %685 = vperm.xlu1 %1399, %v675_v3   ;;  %s575_s15 = scalar_lea.vmem %s1958_s0, %s1264_s17  ;;  %s583_s4 = scalar_lea.vmem %s1959_s1, %s1264_s17 }
  0x26   : > { %657 = vperm.xlu0 %1398, %v647_v4   ;;  %v1267_v21 = vld [vmem:[%s575_s15] sm:$0xff]   ;;  %v1282_v27 = vld [vmem:[%s575_s15 + $0x8] sm:$0xff]   ;;  %s1781_s17 = sshll.u32 %s551_s24, 1  ;;  %s1011_s16 = scalar_lea.sflag [#allocation3], %s551_s24 }
  0x27   : > { %v1275_v22 = vld [vmem:[%s583_s4] sm:$0xff]   ;;  %v1268_v23 = vunpack.c.l.bf16 %v1267_v21  ;;  %v1269_v24 = vunpack.c.h.bf16 %v1267_v21  ;;  %v1283_v28 = vld [vmem:[%s583_s4 + $0x8] sm:$0xff]   ;;  %v1272_v29 = vunpack.c.l.bf16 %v1282_v27  ;;  %v1273_v33 = vunpack.c.h.bf16 %v1282_v27  ;;  %s553_s22 = scalar_lea.vmem [#allocation2], %s1781_s17  ;;  %s1796_s4 = sshll.u32 %s1538_s21, 5 }
  0x28   : > { %v1276_v25 = vunpack.c.l.bf16 %v1275_v22  ;;  %v1277_v26 = vunpack.c.h.bf16 %v1275_v22  ;;  %v1280_v30 = vunpack.c.l.bf16 %v1283_v28  ;;  %v1281_v34 = vunpack.c.h.bf16 %v1283_v28  ;;  %s1802_s26 = scalar_lea.hbm %s1934_s13, %s1796_s4  ;;  %s1035_s27 = sshll.u32 %s553_s22, 4  ;;  %s1036_s27 = int_to_ptr.vmem [resolvable:$true] %s1035_s27 }
  0x29   : > { %667 = vperm.xlu1 %1399, %v649_v5   ;;  %s1408_s15 = scalar_lea.vmem %s1036_s27, 32  ;;  %s1414_s21 = scalar_lea.vmem %s1413_s3, 64 }
  0x2a   : > { %662 = vperm.xlu0 %1398, %v648_v6   ;;  %v605_v31 = vadd.f32 %v1276_v25, %v1268_v23  ;;  %v606_v32 = vadd.f32 %v1277_v26, %v1269_v24  ;;  %v607_v35 = vadd.f32 %v1280_v30, %v1272_v29  ;;  %v608_v39 = vadd.f32 %v1281_v34, %v1273_v33  ;;  %v704_v29 = vld [vmem:[%s1960_s5] sm:$0x1]  ;;  %v1401_v30 = vld [vmem:[%s1928_s7 + $0x8] sm:$0xff]   ;;  %p1409_p12 = scmp.ne.s32.totalorder %s1036_s27, %s1408_s15  ;;  %p1415_p1 = scmp.lt.s32.totalorder %s1036_s27, %s1413_s3 }
  0x2b   : > { %p1416_p2 = scmp.lt.s32.totalorder %s1414_s21, %s1408_s15 }
  0x2c   : > { %v609_v36 = vadd.f32 %v606_v32, %v605_v31  ;;  %v618_v37 = vmul.f32 %v605_v31, %v605_v31  ;;  %v619_v38 = vmul.f32 %v606_v32, %v606_v32  ;;  %v620_v41 = vmul.f32 %v607_v35, %v607_v35  ;;  %p1410_p13 = pnand %p1409_p12, %p1676_p4 }
  0x2d   : > { %695 = vperm.xlu1 %1399, %v677_v7   ;;  %v621_v44 = vmul.f32 %v608_v39, %v608_v39  ;;  %p1417_p3 = por %p1416_p2, %p1415_p1 }
  0x2e   : > { %690 = vperm.xlu0 %1398, %v676_v8   ;;  %v610_v40 = vadd.f32 %v609_v36, %v607_v35  ;;  %v622_v42 = vadd.f32 %v619_v38, %v618_v37  ;;  %p1411_p0 = pneg %p1410_p13 }
  0x30   : > { %v611_v43 = vadd.f32 %v610_v40, %v608_v39  ;;  %v623_v45 = vadd.f32 %v622_v42, %v620_v41  ;;  %p1418_p5 = pnand %p1417_p3, %p1411_p0 }
  0x31   : > { %770 = vperm.xlu1 %1399, %v760_v10  }
  0x32   : > { %765 = vperm.xlu0 %1398, %v759_v11   ;;  %v612_v46 = vrot.slane %v611_v43, 4  ;;  %v624_v47 = vadd.f32 %v623_v45, %v621_v44 }
  0x34   : > { %v613_v48 = vadd.f32 %v612_v46, %v611_v43  ;;  %v625_v49 = vrot.slane %v624_v47, 4 }
  0x35   : > { %780 = vperm.xlu1 %1399, %v762_v12  }
  0x36   : > { %775 = vperm.xlu0 %1398, %v761_v13   ;;  %v614_v50 = vrot.slane %v613_v48, 2  ;;  %v626_v51 = vadd.f32 %v625_v49, %v624_v47 }
  0x38   : > { %v615_v52 = vadd.f32 %v614_v50, %v613_v48  ;;  %v627_v53 = vrot.slane %v626_v51, 2 }
  0x39   : > { %869 = vperm.xlu1 %1399, %v859_v15  }
  0x3a   : > { %864 = vperm.xlu0 %1398, %v858_v16   ;;  %v616_v54 = vrot.slane %v615_v52, 1  ;;  %v628_v55 = vadd.f32 %v627_v53, %v626_v51 }
  0x3c   : > { %v617_v56 = vadd.f32 %v616_v54, %v615_v52  ;;  %v629_v57 = vrot.slane %v628_v55, 1 }
  0x3d   : > { %879 = vperm.xlu1 %1399, %v861_v17  }
  0x3e   : > { %874 = vperm.xlu0 %1398, %v860_v18   ;;  %v630_v58 = vadd.f32 %v629_v57, %v628_v55  ;;  %v631_v59 = vmul.f32 0.03125, %v617_v56 }
  0x40   : > { %v632_v60 = vmul.f32 0.03125, %v630_v58  ;;  %v633_v61 = vmul.f32 %v631_v59, %v631_v59  ;;  %v636_v1 = vsub.f32 %v605_v31, %v631_v59  ;;  %v637_v3 = vsub.f32 %v606_v32, %v631_v59  ;;  %v1402_v31 = vld [vmem:[%s1930_s9] sm:$0xff]   ;;  %v1403_v58 = vld [vmem:[%s1930_s9 + $0x8] sm:$0xff]  }
  0x41   : > { %708 = vperm.xlu1 %1399, %v705_v19   ;;  %v639_v10 = vsub.f32 %v608_v39, %v631_v59  ;;  %v638_v11 = vsub.f32 %v607_v35, %v631_v59 }
  0x42   : > { %957 = vperm.xlu0 %1398, %v954_v20   ;;  %v634_v62 = vsub.f32 %v632_v60, %v633_v61 }
  0x44   : > { %v635_v63 = vmax.f32 %v634_v62, 0.0 }
  0x46   : > { %v640_v0 = vadd.f32 1e-05, %v635_v63 }
  0x48   : > { %1404 = vrsqrt.f32 %v640_v0 }
  0x52   : > { %v1405_v2 = vpop.eup %1404 }
  0x53   : > { %v642_v4 = vmul.f32 %v1405_v2, %v636_v1  ;;  %v643_v7 = vmul.f32 %v1405_v2, %v637_v3  ;;  %v645_v17 = vmul.f32 %v1405_v2, %v639_v10  ;;  %v644_v18 = vmul.f32 %v1405_v2, %v638_v11 }
  0xa0   : > { %v681_v5 = vpop.permute.xlu1 %680 }
  0xa1   : > { %v653_v6 = vpop.permute.xlu0 %652 }
  0xa2   : > { %v670_v8 = vmul.f32 %v653_v6, %v642_v4 }
  0xa4   : > { %v686_v12 = vpop.permute.xlu1 %685  ;;  %v698_v15 = vadd.f32 %v681_v5, %v670_v8 }
  0xa5   : > { %v658_v13 = vpop.permute.xlu0 %657 }
  0xa6   : > { %v671_v14 = vmul.f32 %v658_v13, %v643_v7 }
  0xa8   : > { %v699_v16 = vadd.f32 %v686_v12, %v671_v14  ;;  %v668_v19 = vpop.permute.xlu1 %667  ;;  %v951_v12 = vld [vmem:[%s1932_s11] sm:$0x1] }
  0xa9   : > { %v663_v20 = vpop.permute.xlu0 %662  ;;  %v673_v22 = vmul.f32 %v668_v19, %v645_v17 }
  0xaa   : > { %v702_v21 = vpack.c.bf16 %v699_v16, %v698_v15  ;;  %v672_v23 = vmul.f32 %v663_v20, %v644_v18 }
  0xac   : > { %1299 = vmatpush3.bf16.msra.mxu0 %v702_v21  ;;  %1306 = vmatprep.subr.bf16.mxu1 %v702_v21  ;;  %v696_v24 = vpop.permute.xlu1 %695 }
  0xad   : > { %v691_v25 = vpop.permute.xlu0 %690  ;;  %1307 = vmatpush3.bf16.msra.mxu1 %v702_v21  ;;  %1300 = vmatprep.subr.bf16.mxu0 %v1549_v9  ;;  %v701_v26 = vadd.f32 %v696_v24, %v673_v22 }
  0xae   : > { %v700_v27 = vadd.f32 %v691_v25, %v672_v23 }
  0xb0   : > { %v703_v28 = vpack.c.bf16 %v701_v26, %v700_v27  ;;  %v771_v32 = vpop.permute.xlu1 %770 }
  0xb1   : > { %v766_v35 = vpop.permute.xlu0 %765 }
  0xb2   : > { %1301 = vmatpush3.bf16.msra.mxu0 %v703_v28  ;;  %1308 = vmatprep.subr.bf16.mxu1 %v703_v28 }
  0xb3   : > { %1309 = vmatpush3.bf16.msra.mxu1 %v703_v28 }
  0xb4   : > { %1322 = vmatprep.subr.bf16.mxu1 %v1549_v9  ;;  %v781_v33 = vpop.permute.xlu1 %780 }
  0xb5   : > { %1303 = vmatmul.mubr.msk.bf16.vlgmr.msra.gmra.mrb[0].mxu0 %vm711_vm0, %v704_v29  ;;  %v776_v37 = vpop.permute.xlu0 %775 }
  0xb6   : > { %1311 = vmatmul.mubr.msk.bf16.vlgmr.msra.gmra.mrb[0].mxu1 %vm711_vm0, %v1401_v30  ;;  %1318 = vmatprep.mubr.msk.bf16.mxu0 %vm711_vm0, %v1402_v31 }
  0xb7   : > { %1326 = vmatprep.mubr.msk.bf16.mxu1 %vm1550_vm1, %v1549_v9 }
  0xb8   : > { %v870_v34 = vpop.permute.xlu1 %869 }
  0xb9   : > { %v865_v59 = vpop.permute.xlu0 %864 }
  0xbc   : > { %v880_v36 = vpop.permute.xlu1 %879 }
  0xbd   : > { %v875_v60 = vpop.permute.xlu0 %874 }
  0xc0   : > { %v709_v38 = vpop.permute.xlu1 %708 }
 0x188   : > { %v749_v39 = vpop.f32.mrb[0].mxu0 }
 0x189   : > { %v750_v40 = vadd.f32 %v749_v39, %v709_v38  ;;  %v1312_v41 = vpop.f32.mrb[0].mxu1  ;;  %v1304_v42 = vpop.f32.mrb[1].mxu0 }
 0x18a   : > { %v842_v43 = vadd.f32 %v1312_v41, %v776_v37  ;;  %v833_v44 = vpop.f32.mrb[1].mxu1  ;;  %v752_v45 = vpop.f32.mrb[2].mxu0 }
 0x18b   : > { %1007 = vst [vmem:[%s553_s22] sm:$0x3] %v750_v40  ;;  %v834_v46 = vadd.f32 %v833_v44, %v766_v35  ;;  %v1313_v47 = vpop.f32.mrb[2].mxu1  ;;  %v1305_v48 = vpop.f32.mrb[3].mxu0 }
 0x18c   : > { %v845_v49 = vadd.f32 %v1313_v47, %v781_v33  ;;  %v836_v50 = vpop.f32.mrb[3].mxu1  ;;  %v850_v52 = vmax.f32 %v842_v43, 0.0 }
 0x18d   : > { %v837_v51 = vadd.f32 %v836_v50, %v771_v32  ;;  %v848_v54 = vmax.f32 %v834_v46, 0.0 }
 0x18e   : > { %v851_v53 = vmax.f32 %v845_v49, 0.0 }
 0x18f   : > { %v849_v55 = vmax.f32 %v837_v51, 0.0 }
 0x190   : > { %v857_v56 = vpack.c.bf16 %v851_v53, %v850_v52 }
 0x191   : > { %v856_v57 = vpack.c.bf16 %v849_v55, %v848_v54 }
 0x193   : > { %1314 = vmatprep.subr.bf16.mxu0 %v856_v57 }
 0x194   : > { %1315 = vmatpush3.bf16.msra.mxu0 %v856_v57 }
 0x195   : > { %1316 = vmatprep.subr.bf16.mxu0 %v857_v56 }
 0x198   : > { %1317 = vmatpush3.bf16.msra.mxu0 %v857_v56 }
 0x19b   : > { %1319 = vmatmul.mubr.msk.bf16.vlgmr.msra.gmra.mrb[4].mxu0 %vm711_vm0, %v1403_v58 }
 0x26e   : > { %v1320_v61 = vpop.f32.mrb[4].mxu0 }
 0x26f   : > { %v941_v62 = vadd.f32 %v1320_v61, %v875_v60  ;;  %v932_v63 = vpop.f32.mrb[5].mxu0 }
 0x270   : > { %v933_v0 = vadd.f32 %v932_v63, %v865_v59  ;;  %v1321_v1 = vpop.f32.mrb[6].mxu0 }
 0x271   : > { %v944_v2 = vadd.f32 %v1321_v1, %v880_v36  ;;  %v935_v3 = vpop.f32.mrb[7].mxu0  ;;  %v949_v5 = vmax.f32 %v941_v62, 0.0 }
 0x272   : > { %v936_v4 = vadd.f32 %v935_v3, %v870_v34  ;;  %v947_v7 = vmax.f32 %v933_v0, 0.0 }
 0x273   : > { %v950_v6 = vmax.f32 %v944_v2, 0.0 }
 0x274   : > { %v948_v8 = vmax.f32 %v936_v4, 0.0 }
 0x275   : > { %v953_v10 = vpack.c.bf16 %v950_v6, %v949_v5 }
 0x276   : > { %v952_v11 = vpack.c.bf16 %v948_v8, %v947_v7 }
 0x278   : > { %1323 = vmatpush3.bf16.msra.mxu1 %v952_v11 }
 0x279   : > { %1324 = vmatprep.subr.bf16.mxu1 %v1549_v9 }
 0x27c   : > { %1325 = vmatpush3.bf16.msra.mxu1 %v953_v10 }
 0x27f   : > { %1327 = vmatmul.mubr.msk.bf16.vlgmr.msra.gmra.mrb[4].mxu1 %vm711_vm0, %v951_v12 }
 0x280   : > { %1421 = shalt.err (!%p1418_p5)
}
 0x281   : > { %s1422_s24 = scalar_lea.hbm %s1802_s26, 32  ;;  %s1426_s29 = scalar_lea.hbm %s1934_s13, 64 }
 0x282   : > { %p1423_p6 = scmp.ne.s32.totalorder %s1802_s26, %s1422_s24  ;;  %p1427_p10 = scmp.lt.u32.totalorder %s1802_s26, %s1934_s13 }
 0x283   : > { %p1428_p11 = scmp.lt.u32.totalorder %s1426_s29, %s1422_s24  ;;  %p1430_p13 = scmp.lt.u32.totalorder %s1422_s24, %s1802_s26 }
 0x284   : > { %p1424_p7 = pnand %p1423_p6, %p1676_p4 }
 0x285   : > { %p1429_p12 = por %p1428_p11, %p1427_p10 }
 0x286   : > { %p1425_p9 = pneg %p1424_p7 }
 0x287   : > { %p1431_p0 = por %p1430_p13, %p1429_p12 }
 0x289   : > { %p1432_p1 = pnand %p1431_p0, %p1425_p9 }
 0x28b   : > { %1435 = shalt.err (!%p1432_p1)
}
 0x28c   : > { %1330 = dma.vmem_to_hbm [thread:$0]  (%p1676_p4), %s1036_s27, 32, %s1802_s26, %s1011_s16   ;;  %v958_v9 = vpop.permute.xlu0 %957 }
 0x28d   : > { %s1961_s15 = sadd.s32 4294967295, %s1546_s23   ;;  %s1962_s2 = sld [smem:[#allocation15_spill]] }
 0x28e   : > { %s1827_s21 = sand.u32 1, %s1961_s15   ;;  %s560_s26 = scalar_lea.vmem [#allocation4], %s1781_s17 }
 0x28f   : > { %s1049_s27 = sshll.u32 %s560_s26, 4  ;;  %s567_s16 = scalar_lea.vmem [#allocation6], %s1781_s17  ;;  %s1840_s27 = int_to_ptr.vmem [resolvable:$true] %s1049_s27 }
 0x290   : > { %s1063_s25 = sshll.u32 %s567_s16, 4  ;;  %s1838_s3 = scalar_lea.hbm %s1935_s14, %s1796_s4  ;;  %s1848_s25 = int_to_ptr.vmem [resolvable:$true] %s1063_s25 }
 0x291   : > { %s1963_s22 = sld [smem:[#allocation19_spill]]  ;;  %s1016_s17 = scalar_lea.sflag [#allocation5], %s1827_s21 }
 0x292   : > { %s1552_s29 = smov [#allocation4]  }
 0x293   : > { %v1005_v19 = vld [vmem:[%s1962_s2] sm:$0x3]  ;;  %s1436_s2 = scalar_lea.vmem %s1840_s27, 32  ;;  %s1440_s18 = sshll.u32 %s1552_s29, 4  ;;  %s1441_s18 = int_to_ptr.vmem [resolvable:$false] %s1440_s18 }
 0x294   : > { %p1437_p2 = scmp.ne.s32.totalorder %s1840_s27, %s1436_s2  ;;  %s1442_s5 = scalar_lea.vmem %s1441_s18, 64 }
 0x295   : > { %p1443_p6 = scmp.lt.s32.totalorder %s1840_s27, %s1441_s18  ;;  %p1444_p7 = scmp.lt.s32.totalorder %s1442_s5, %s1436_s2 }
 0x296   : > { %p1438_p3 = pnand %p1437_p2, %p1676_p4 }
 0x297   : > { %s1964_s0 = smov %s1963_s22  ;;  %s1846_s1 = scalar_lea.hbm %s1963_s22, %s1796_s4 }
 0x298   : > { %p1439_p5 = pneg %p1438_p3  ;;  %p1445_p9 = por %p1444_p7, %p1443_p6 }
 0x29a   : > { %p1446_p10 = pnand %p1445_p9, %p1439_p5 }
 0x352   : > { %v997_v13 = vpop.f32.mrb[4].mxu1 }
 0x353   : > { %v998_v14 = vadd.f32 %v997_v13, %v958_v9  ;;  %v1328_v15 = vpop.f32.mrb[5].mxu1 }
 0x354   : > { %v1000_v16 = vpop.f32.mrb[6].mxu1 }
 0x355   : > { %v1003_v17 = vmul.f32 0.5, %v998_v14  ;;  %v1329_v18 = vpop.f32.mrb[7].mxu1 }
 0x357   : > { %1406 = vtanh.f32 %v1003_v17 }
 0x361   : > { %v1407_v20 = vpop.eup %1406 }
 0x362   : > { %v1006_v21 = vadd.f32 %v1407_v20, %v1005_v19  ;;  %1009 = vst [vmem:[%s567_s16] sm:$0x3] %v1407_v20 }
 0x364   : > { %1008 = vst [vmem:[%s560_s26] sm:$0x3] %v1006_v21 }
 0x365   : > { %1449 = shalt.err (!%p1446_p10)
}
 0x366   : > { %s1450_s4 = scalar_lea.hbm %s1838_s3, 32  ;;  %s1454_s15 = scalar_lea.hbm %s1935_s14, 64 }
 0x367   : > { %p1451_p11 = scmp.ne.s32.totalorder %s1838_s3, %s1450_s4  ;;  %p1455_p0 = scmp.lt.u32.totalorder %s1838_s3, %s1935_s14 }
 0x368   : > { %p1456_p1 = scmp.lt.u32.totalorder %s1454_s15, %s1450_s4  ;;  %p1458_p3 = scmp.lt.u32.totalorder %s1450_s4, %s1838_s3 }
 0x369   : > { %p1452_p12 = pnand %p1451_p11, %p1676_p4 }
 0x36a   : > { %p1457_p2 = por %p1456_p1, %p1455_p0 }
 0x36b   : > { %p1453_p13 = pneg %p1452_p12 }
 0x36c   : > { %p1459_p5 = por %p1458_p3, %p1457_p2 }
 0x36e   : > { %p1460_p6 = pnand %p1459_p5, %p1453_p13 }
 0x370   : > { %1463 = shalt.err (!%p1460_p6)
}
 0x371   : > { %1331 = dma.vmem_to_hbm [thread:$0]  (%p1676_p4), %s1840_s27, 32, %s1838_s3, %s1016_s17  }
 0x372   : > { %s1464_s2 = scalar_lea.vmem %s1848_s25, 32  ;;  %s1553_s5 = smov [#allocation6]  }
 0x373   : > { %p1465_p7 = scmp.ne.s32.totalorder %s1848_s25, %s1464_s2  ;;  %s1468_s29 = sshll.u32 %s1553_s5, 4  ;;  %s1469_s29 = int_to_ptr.vmem [resolvable:$false] %s1468_s29 }
 0x374   : > { %s1470_s18 = scalar_lea.vmem %s1469_s29, 64  ;;  %p1471_p11 = scmp.lt.s32.totalorder %s1848_s25, %s1469_s29 }
 0x375   : > { %p1466_p9 = pnand %p1465_p7, %p1676_p4  ;;  %p1472_p12 = scmp.lt.s32.totalorder %s1470_s18, %s1464_s2 }
 0x377   : > { %p1467_p10 = pneg %p1466_p9  ;;  %p1473_p13 = por %p1472_p12, %p1471_p11 }
 0x379   : > { %p1474_p0 = pnand %p1473_p13, %p1467_p10 }
 0x37b   : > { %1477 = shalt.err (!%p1474_p0)
}
 0x37c   : > { %s1478_s27 = scalar_lea.hbm %s1846_s1, 32  ;;  %s1482_s26 = scalar_lea.hbm %s1964_s0, 64 }
 0x37d   : > { %p1479_p1 = scmp.ne.s32.totalorder %s1846_s1, %s1478_s27  ;;  %p1483_p5 = scmp.lt.u32.totalorder %s1846_s1, %s1964_s0 }
 0x37e   : > { %p1484_p6 = scmp.lt.u32.totalorder %s1482_s26, %s1478_s27  ;;  %p1486_p9 = scmp.lt.u32.totalorder %s1478_s27, %s1846_s1 }
 0x37f   : > { %p1480_p2 = pnand %p1479_p1, %p1676_p4 }
 0x380   : > { %p1485_p7 = por %p1484_p6, %p1483_p5 }
 0x381   : > { %p1481_p3 = pneg %p1480_p2 }
 0x382   : > { %p1487_p10 = por %p1486_p9, %p1485_p7 }
 0x384   : > { %p1488_p11 = pnand %p1487_p10, %p1481_p3 }
 0x386   : > { %1491 = shalt.err (!%p1488_p11)
}
 0x387   : > { %1332 = dma.vmem_to_hbm [thread:$0]  (%p1676_p4), %s1848_s25, 32, %s1846_s1, %s1016_s17  }
 0x388 PF: > { %s1965_s24 = sld [smem:[#allocation9_spill]]  ;;  %p1346_p12 = scmp.ge.s32.totalorder %s1546_s23, 2 }
 0x38a   : > { %p1337_p13 = pnand %p1346_p12, %p1685_p8 }
 0x38e   : > { %s1075_s22 = sand.u32 1, %s1965_s24  }
 0x38f   : > { %s1076_s2 = scalar_lea.sflag [#allocation3], %s1075_s22 }
 0x390   : > { %1517 = dma.done.wait (!%p1337_p13), %s1076_s2, 32  }
 0x391   : > { %1519 = vsyncadd (!%p1337_p13), %s1076_s2, 4294967264  ;;  %s1966_s5 = sadd.s32 4294967294, %s1546_s23  }
 0x392   : > { %s1084_s29 = sand.u32 1, %s1966_s5  }
 0x393   : > { %s1085_s28 = scalar_lea.sflag [#allocation5], %s1084_s29 }
 0x394   : > { %1521 = dma.done.wait (!%p1337_p13), %s1085_s28, 64  }
 0x395   : > { %1523 = vsyncadd (!%p1337_p13), %s1085_s28, 4294967232  ;;  %s32_s23 = sadd.s32 1, %s1546_s23   ;;  %s1967_s1 = sld [smem:[#allocation12_spill]] }
 0x396   : > { %p29_p4 = scmp.ge.s32.totalorder %s32_s23, 4   ;;  %s1968_s21 = sld [smem:[#allocation10_spill]] }
 0x397   : > { %s1969_s22 = sld [smem:[#allocation11_spill]]  ;;  %s1970_s18 = smov %s1530_s19 }
 0x398   : > { %s1971_s19 = smov %s1534_s20  ;;  %31 = sbr.rel (!%p29_p4) target bundleno = 14 (0xe), region = 145 }
 0x39b   : > { %s1972_s20 = smov %s1967_s1 }
 0x39f   :  { %1099 = vsyncpa [#allocation3], 1 }
 0x3a0   :  { %1101 = vsyncpa [#allocation3 + $0x1], 1 }
 0x3a1   :  { %1102 = vsyncpa [#allocation5], 1 }
 0x3a2   :  { %1104 = vsyncpa [#allocation5 + $0x1], 1 }

</bundles_post_ra>
